<compile_context>
chip_gen: v7x
topology: tpu7x:2x2x1
jax: 0.10.0
libtpu: 0.0.40
codegen_flags: <defaults>
</compile_context>

<pallas_src>
import jax
import jax.numpy as jnp
from jax.experimental import pallas as pl
from jax.experimental.pallas import tpu as pltpu


# ----------------------------------------------------------------------------
# Demo kernel 1: cheapest dispatched identity — one HBM -> HBM DMA.
# ----------------------------------------------------------------------------
def _hbm_copy_kernel(x_hbm_ref, o_hbm_ref, sem):
    # Single DMA, HBM -> HBM.  No VMEM round-trip, no vld/vst, no pipeline.
    cp = pltpu.make_async_copy(x_hbm_ref, o_hbm_ref, sem)
    cp.start()
    cp.wait()


def identity_copy_hbm(x: jax.Array) -> jax.Array:
    """Identity copy as a single HBM->HBM async copy (no VMEM staging)."""
    return pl.pallas_call(
        _hbm_copy_kernel,
        out_shape=jax.ShapeDtypeStruct(x.shape, x.dtype),
        in_specs=[pl.BlockSpec(memory_space=pl.ANY)],
        out_specs=pl.BlockSpec(memory_space=pl.ANY),
        scratch_shapes=[pltpu.SemaphoreType.DMA(())],
    )(x)


# ----------------------------------------------------------------------------
# Demo kernel 2: tiled BlockSpec copy with VMEM-budget-aware 2D tiling.
# ----------------------------------------------------------------------------
def _tiled_copy_kernel(x_ref, o_ref):
    o_ref[...] = x_ref[...]


# Sized against the smallest scoped-VMEM default of the three generations
# (v5e: 16 MiB).  Footprint ~ 4x block bytes (double-buffered input + output),
# so capping block bytes at budget/5 leaves ~20% headroom everywhere.
_DEMO_VMEM_BUDGET_BYTES = 12 * 1024 * 1024


def _largest_tile(n: int, unit: int, cap_elems: int) -> int:
    """Largest multiple of `unit` that divides n and is <= cap_elems (>= unit)."""
    cap_elems = max(unit, min(n, cap_elems))
    best = unit
    for t in range(unit, cap_elems + 1, unit):
        if n % t == 0:
            best = t
    return best


def identity_copy_tiled(
    x: jax.Array,
    *,
    vmem_budget_bytes: int = _DEMO_VMEM_BUDGET_BYTES,
    donate: bool = False,
) -> jax.Array:
    """Tiled identity copy; block shape derived from a per-generation-safe VMEM budget."""
    rows, cols = x.shape
    itemsize = jnp.dtype(x.dtype).itemsize
    assert rows % 8 == 0 and cols % 128 == 0, (
        "demo kernel expects (8,128)-aligned shapes"
    )

    block_budget = vmem_budget_bytes // 5  # ~4x block resident + headroom
    # Lane-dense columns first (multiple of 128, as wide as the budget allows
    # with at least 8 rows), then rows from the remaining budget.  This keeps
    # stores unmasked (vst) and decouples VMEM footprint from total width.
    block_cols = _largest_tile(cols, 128, block_budget // (8 * itemsize))
    block_rows = _largest_tile(rows, 8, block_budget // (block_cols * itemsize))
    grid = (rows // block_rows, cols // block_cols)

    return pl.pallas_call(
        _tiled_copy_kernel,
        out_shape=jax.ShapeDtypeStruct((rows, cols), x.dtype),
        grid=grid,
        in_specs=[pl.BlockSpec((block_rows, block_cols), lambda i, j: (i, j))],
        out_specs=pl.BlockSpec((block_rows, block_cols), lambda i, j: (i, j)),
        # Optional donation: removes the fresh HBM allocation for this
        # mem-bound copy.  Callers must NOT read x after a donate=True call.
        input_output_aliases=({0: 0} if donate else {}),
        compiler_params=pltpu.CompilerParams(
            # Independent tiles on both axes -> megacore sharding on v7x;
            # measured no-op on single-TC v5e/v6e.
            dimension_semantics=("parallel", "parallel"),
            # Explicit scoped-VMEM limit valid on all three generations
            # (v5e/v6e physical 128 MiB, v7x physical 64 MiB).
            vmem_limit_bytes=32 * 1024 * 1024,
        ),
    )(x)


# ----------------------------------------------------------------------------
# The module itself.
# ----------------------------------------------------------------------------
class CustomLoss:
    """JAX/Pallas equivalent of the PyTorch CustomLoss module.

    __init__ defines no parameters; forward() takes no arguments, returns
    None, and dispatches no kernel — exactly matching the reference
    semantics.  The Pallas copy kernels above are deliberately dead code
    relative to this module (demo-only, see __main__).
    """

    def __init__(self):
        # No parameters to initialize (reference __init__ is empty).
        pass

    def forward(self):
        # TODO(synk): reference forward() is an empty stub (returns None);
        # there is no loss computation to lower into a kernel, so none is run.
        return None

    def __call__(self):
        return self.forward()


if __name__ == "__main__":
    # Faithful forward-pass semantics: no inputs, returns None, no kernel.
    loss_mod = CustomLoss()
    assert loss_mod() is None

    # ---- demo-only kernel dispatches (kept off the module path) -----------
    key = jax.random.PRNGKey(0)
    x = jax.random.normal(key, (512, 512), dtype=jnp.float32)

    # 1) Cheapest dispatched identity: one HBM->HBM DMA (no VMEM staging).
    y_hbm = identity_copy_hbm(x)
    jax.block_until_ready(y_hbm)
    assert y_hbm.shape == x.shape and y_hbm.dtype == x.dtype
    assert bool(jnp.array_equal(y_hbm, x))

    # 2) Budget-tiled BlockSpec path with input->output aliasing.  x is
    #    donated here, so it is NOT referenced afterwards; correctness is
    #    checked against the independent buffer y_hbm instead.
    y_tiled = identity_copy_tiled(x, donate=True)
    jax.block_until_ready(y_tiled)
    assert y_tiled.shape == y_hbm.shape and y_tiled.dtype == y_hbm.dtype
    assert bool(jnp.array_equal(y_tiled, y_hbm))

    print("KERNEL_OK")
</pallas_src>

<mosaic_0001>
module attributes {stable_mosaic.version = 11 : i64} {
  func.func @_hbm_copy_kernel(%arg0: memref<512x512xf32, #tpu.memory_space<any>>, %arg1: memref<512x512xf32, #tpu.memory_space<any>>, %arg2: memref<!tpu.dma_semaphore, #tpu.memory_space<semaphore_mem>>) attributes {dimension_semantics = [], scalar_prefetch = 0 : i64, scratch_operands = 1 : i64, tpu.core_type = #tpu.core_type<tc>} {
    tpu.enqueue_dma source(%arg0 : memref<512x512xf32, #tpu.memory_space<any>>) target(%arg1 : memref<512x512xf32, #tpu.memory_space<any>>) target_semaphore(%arg2 : memref<!tpu.dma_semaphore, #tpu.memory_space<semaphore_mem>>)
    tpu.wait_dma2 semaphore(%arg2 : memref<!tpu.dma_semaphore, #tpu.memory_space<semaphore_mem>>) src(%arg0 : memref<512x512xf32, #tpu.memory_space<any>>) dst(%arg1 : memref<512x512xf32, #tpu.memory_space<any>>)
    return
  }
}

</mosaic_0001>

<bundles_post_ra>
// kernel: tpu_custom_call.1
= control target key start
LH: loop header
LB: loop body
LE: loop exit
PB: predicated region body
PF: predicated region fallthrough
CT: control target
= control target key end

     0   :  { %s35_s6 = smov [#allocation2]   ;;  %s36_s7 = smov [#allocation3]   ;;  %s54_s0 = inlined_call_operand.hbm [shape: f32[512,512], index: 0, kind: input, shape index: {}]   ;;  %s55_s1 = inlined_call_operand.hbm [shape: f32[512,512], index: 1, kind: output, shape index: {}]  }
   0x1   :  { %s37_s8 = smov 0  }
   0x2   :  { %18 = dma.general %s54_s0, 32768, %s55_s1, %s35_s6, %s36_s7, [#allocation4], %s37_s8, 0  }
   0x3   :  { %33 = dma.done.wait [#allocation2], 32768 }
   0x4   :  { %34 = vsyncadd [#allocation2], 4294934528 }
   0x5   :  { %23 = vsyncmov [#allocation2] }
   0x8   :  { %s24_s13 = vpop.sfrf %23 }
   0x9   :  { %p29_p0 = scmp.ne.s32.totalorder %s24_s13, 0 }
   0xb   :  { %28 = shalt.err (%p29_p0)  }

</bundles_post_ra>
